<compile_context>
chip_gen: v6e
topology: v6e:2x2x1
jax: 0.10.0
libtpu: 0.0.40
codegen_flags: <defaults>
</compile_context>

<pallas_src>
import jax
import jax.numpy as jnp
from jax.experimental import pallas as pl
from jax.experimental.pallas import tpu as pltpu


def _round_up(x, m):
    return ((x + m - 1) // m) * m


def mlp_kernel(x_ref,
               w1_ref, b1_ref,
               w2_ref, b2_ref,
               w3_ref, b3_ref,
               w4_ref, b4_ref,
               w5t_ref, b5_ref,
               o_ref):
    # bf16 operands on the MXU (weights are pre-cast in the wrapper), f32 accumulation.
    h = x_ref[...].astype(jnp.bfloat16)

    h = jnp.dot(h, w1_ref[...], preferred_element_type=jnp.float32) + b1_ref[...]
    h = jnp.maximum(h, 0.0).astype(jnp.bfloat16)

    h = jnp.dot(h, w2_ref[...], preferred_element_type=jnp.float32) + b2_ref[...]
    h = jnp.maximum(h, 0.0).astype(jnp.bfloat16)

    h = jnp.dot(h, w3_ref[...], preferred_element_type=jnp.float32) + b3_ref[...]
    h = jnp.maximum(h, 0.0).astype(jnp.bfloat16)

    h = jnp.dot(h, w4_ref[...], preferred_element_type=jnp.float32) + b4_ref[...]
    h = jnp.maximum(h, 0.0)                                        # (tm, 64) f32

    # Final 64 -> 1 layer on the VPU/XLU (broadcast-multiply + lane reduction)
    # instead of an N=1 MXU matmul; written lane-dense as a (1, tm) row.
    out = jnp.sum(h * w5t_ref[...], axis=-1).reshape(1, -1) + b5_ref[...]
    o_ref[...] = out.astype(o_ref.dtype)


def prepare_params(params):
    """One-time conversion of f32 params for the kernel:
    MXU-layer weights -> bf16, final layer -> lane-dense f32 row, biases stay f32."""
    prep = {}
    for idx in range(1, 5):
        prep[f"w{idx}"] = params[f"w{idx}"].astype(jnp.bfloat16)
        prep[f"b{idx}"] = params[f"b{idx}"].astype(jnp.float32)
    prep["w5t"] = params["w5"].reshape(1, -1).astype(jnp.float32)   # (1, 64)
    prep["b5"] = params["b5"].astype(jnp.float32)                   # (1, 1)
    return prep


def hybrid_model_forward(x, prep, *, tm=None):
    """x: (B, D) float32.  prep: output of prepare_params()."""
    B, D = x.shape

    if tm is None:
        if B <= 256:
            tm = _round_up(B, 8)          # tiny batch: a single grid step
        else:
            # Big tiles amortize the ~0.35 us/step pipeline overhead; keep tm a
            # multiple of 256 (MXU-friendly M tiling on all generations) and cap
            # it so the grid retains >= 2 steps for v7x's two TensorCores.
            tm = min(1024, _round_up(pl.cdiv(B, 2), 256))

    B_pad = _round_up(B, tm)
    x_p = jnp.pad(x, ((0, B_pad - B), (0, 0))) if B_pad != B else x

    w1, b1 = prep["w1"], prep["b1"]
    w2, b2 = prep["w2"], prep["b2"]
    w3, b3 = prep["w3"], prep["b3"]
    w4, b4 = prep["w4"], prep["b4"]
    w5t, b5 = prep["w5t"], prep["b5"]

    def full_spec(a):
        # Constant index_map => pipeline-invariant block: weights are DMA'd into
        # VMEM once and stay resident across all grid steps.
        return pl.BlockSpec(a.shape, lambda i: (0, 0))

    # x is the only per-step streamed operand; only at large D is its DMA big
    # enough to risk being exposed at the default depth-2 pipeline.
    if D >= 1024:
        x_spec = pl.BlockSpec((tm, D), lambda i: (i, 0), pipeline_mode=pl.Buffered(3))
        x_bufs = 3
    else:
        x_spec = pl.BlockSpec((tm, D), lambda i: (i, 0))
        x_bufs = 2

    grid_spec = pl.GridSpec(
        grid=(B_pad // tm,),
        in_specs=[
            x_spec,
            full_spec(w1), full_spec(b1),
            full_spec(w2), full_spec(b2),
            full_spec(w3), full_spec(b3),
            full_spec(w4), full_spec(b4),
            full_spec(w5t), full_spec(b5),
        ],
        # Lane-dense output: (1, tm) blocks of a (1, B_pad) result, so every store
        # is a full-width vst rather than a 1-of-128-lane masked store.
        out_specs=pl.BlockSpec((1, tm), lambda i: (0, i)),
    )

    weight_bytes = sum(int(p.size) * p.dtype.itemsize
                       for p in (w1, b1, w2, b2, w3, b3, w4, b4, w5t, b5))
    flops = 2 * B_pad * (D * 512 + 512 * 256 + 256 * 128 + 128 * 64 + 64)
    bytes_accessed = x_p.size * 4 + B_pad * 4 + weight_bytes

    # Explicit scoped-VMEM request with headroom; bounded because v7x has only
    # 64 MiB physical VMEM per TensorCore (32 MiB scoped default).
    vmem_limit = int(
        x_bufs * tm * D * 4                             # streamed x tiles
        + 2 * tm * (512 + 256 + 128 + 64 + 128) * 4     # f32 + bf16 intermediates
        + 2 * weight_bytes                              # resident weights (double-buffered)
        + 4 * 1024 * 1024)                              # compiler scratch slack
    vmem_limit = min(max(vmem_limit, 32 * 1024 * 1024), 56 * 1024 * 1024)

    out = pl.pallas_call(
        mlp_kernel,
        out_shape=jax.ShapeDtypeStruct((1, B_pad), jnp.float32),
        grid_spec=grid_spec,
        compiler_params=pltpu.CompilerParams(
            dimension_semantics=("parallel",),
            vmem_limit_bytes=vmem_limit),
        cost_estimate=pl.CostEstimate(
            flops=flops, transcendentals=0, bytes_accessed=bytes_accessed),
    )(x_p, w1, b1, w2, b2, w3, b3, w4, b4, w5t, b5)

    return out.reshape(B_pad, 1)[:B]


def init_params(key, input_dim):
    """Deterministic parameter init (same shapes as the PyTorch module), f32."""
    dims = [input_dim, 512, 256, 128, 64, 1]
    params = {}
    for idx in range(5):
        fan_in, fan_out = dims[idx], dims[idx + 1]
        key, kw, kb = jax.random.split(key, 3)
        bound = 1.0 / jnp.sqrt(fan_in)
        # stored as (in, out) so the kernel does x @ W; equivalent to PyTorch (out,in).T
        params[f"w{idx + 1}"] = jax.random.uniform(
            kw, (fan_in, fan_out), jnp.float32, -bound, bound)
        params[f"b{idx + 1}"] = jax.random.uniform(
            kb, (1, fan_out), jnp.float32, -bound, bound)
    return params


def reference_forward(x, params):
    h = x
    for idx in range(1, 5):
        h = jnp.maximum(h @ params[f"w{idx}"] + params[f"b{idx}"], 0.0)
    return h @ params["w5"] + params["b5"]


if __name__ == "__main__":
    key = jax.random.PRNGKey(0)
    key, kx = jax.random.split(key)

    batch, input_dim = 16, 32
    x = jax.random.normal(kx, (batch, input_dim), jnp.float32)
    params = init_params(key, input_dim)
    prep = prepare_params(params)

    out = jax.block_until_ready(hybrid_model_forward(x, prep))
    ref = reference_forward(x, params)
    assert out.shape == (batch, 1)
    # bf16 MXU operands (f32 accumulation): tolerance loosened vs. pure-f32 path.
    assert jnp.allclose(out, ref, atol=5e-2, rtol=5e-2), "mismatch vs JAX reference"

    # Non-tile-multiple batch exercises the padding path.
    x_odd = x[:10]
    out_odd = jax.block_until_ready(hybrid_model_forward(x_odd, prep))
    ref_odd = reference_forward(x_odd, params)
    assert out_odd.shape == (10, 1)
    assert jnp.allclose(out_odd, ref_odd, atol=5e-2, rtol=5e-2), "mismatch (ragged batch)"

    # Larger batch exercises the multi-step large-tile grid + lane-dense stores.
    key, kb = jax.random.split(key)
    x_big = jax.random.normal(kb, (600, input_dim), jnp.float32)
    out_big = jax.block_until_ready(hybrid_model_forward(x_big, prep))
    ref_big = reference_forward(x_big, params)
    assert out_big.shape == (600, 1)
    assert jnp.allclose(out_big, ref_big, atol=5e-2, rtol=5e-2), "mismatch (big batch)"

    print("KERNEL_OK")
</pallas_src>

<mosaic_0001>
module attributes {stable_mosaic.version = 11 : i64} {
  func.func @mlp_kernel(%arg0: i32, %arg1: memref<16x32xf32, #tpu.memory_space<vmem>>, %arg2: memref<32x512xbf16, #tpu.memory_space<vmem>>, %arg3: memref<1x512xf32, #tpu.memory_space<vmem>>, %arg4: memref<512x256xbf16, #tpu.memory_space<vmem>>, %arg5: memref<1x256xf32, #tpu.memory_space<vmem>>, %arg6: memref<256x128xbf16, #tpu.memory_space<vmem>>, %arg7: memref<1x128xf32, #tpu.memory_space<vmem>>, %arg8: memref<128x64xbf16, #tpu.memory_space<vmem>>, %arg9: memref<1x64xf32, #tpu.memory_space<vmem>>, %arg10: memref<1x64xf32, #tpu.memory_space<vmem>>, %arg11: memref<1x1xf32, #tpu.memory_space<vmem>>, %arg12: memref<1x16xf32, #tpu.memory_space<vmem>>) attributes {dimension_semantics = [#tpu.dimension_semantics<parallel>], iteration_bounds = array<i64: 1>, scalar_prefetch = 0 : i64, scratch_operands = 0 : i64, tpu.core_type = #tpu.core_type<tc>, window_params = [{transform_indices = @transform_0, window_bounds = array<i64: 16, 32>}, {pipeline_mode = #tpu.pipeline_mode<synchronous>, transform_indices = @transform_1, window_bounds = array<i64: 32, 512>}, {pipeline_mode = #tpu.pipeline_mode<synchronous>, transform_indices = @transform_2, window_bounds = array<i64: 1, 512>}, {pipeline_mode = #tpu.pipeline_mode<synchronous>, transform_indices = @transform_3, window_bounds = array<i64: 512, 256>}, {pipeline_mode = #tpu.pipeline_mode<synchronous>, transform_indices = @transform_4, window_bounds = array<i64: 1, 256>}, {pipeline_mode = #tpu.pipeline_mode<synchronous>, transform_indices = @transform_5, window_bounds = array<i64: 256, 128>}, {pipeline_mode = #tpu.pipeline_mode<synchronous>, transform_indices = @transform_6, window_bounds = array<i64: 1, 128>}, {pipeline_mode = #tpu.pipeline_mode<synchronous>, transform_indices = @transform_7, window_bounds = array<i64: 128, 64>}, {pipeline_mode = #tpu.pipeline_mode<synchronous>, transform_indices = @transform_8, window_bounds = array<i64: 1, 64>}, {pipeline_mode = #tpu.pipeline_mode<synchronous>, transform_indices = @transform_9, window_bounds = array<i64: 1, 64>}, {pipeline_mode = #tpu.pipeline_mode<synchronous>, transform_indices = @transform_10, window_bounds = array<i64: 1, 1>}, {transform_indices = @transform_11, window_bounds = array<i64: 1, 16>}]} {
    %c0 = arith.constant 0 : index
    %c0_0 = arith.constant 0 : index
    %0 = vector.load %arg1[%c0, %c0_0] : memref<16x32xf32, #tpu.memory_space<vmem>>, vector<16x32xf32>
    %1 = arith.truncf %0 : vector<16x32xf32> to vector<16x32xbf16>
    %c0_1 = arith.constant 0 : index
    %c0_2 = arith.constant 0 : index
    %2 = vector.load %arg2[%c0_1, %c0_2] : memref<32x512xbf16, #tpu.memory_space<vmem>>, vector<32x512xbf16>
    %cst = arith.constant dense<0.000000e+00> : vector<16x512xf32>
    %3 = tpu.matmul %1, %2, %cst {dimension_numbers = #tpu.dot_dimension_numbers<[1], [0], [0], [1], [0, 0, 1, 1], [], []>} : vector<16x32xbf16>, vector<32x512xbf16>, vector<16x512xf32> -> vector<16x512xf32>
    %c0_3 = arith.constant 0 : index
    %c0_4 = arith.constant 0 : index
    %4 = vector.load %arg3[%c0_3, %c0_4] : memref<1x512xf32, #tpu.memory_space<vmem>>, vector<1x512xf32>
    %5 = vector.broadcast %4 : vector<1x512xf32> to vector<16x512xf32>
    %6 = arith.addf %3, %5 : vector<16x512xf32>
    %cst_5 = arith.constant 0.000000e+00 : f32
    %7 = vector.broadcast %cst_5 : f32 to vector<16x512xf32>
    %8 = arith.maximumf %6, %7 : vector<16x512xf32>
    %9 = arith.truncf %8 : vector<16x512xf32> to vector<16x512xbf16>
    %c0_6 = arith.constant 0 : index
    %c0_7 = arith.constant 0 : index
    %10 = vector.load %arg4[%c0_6, %c0_7] : memref<512x256xbf16, #tpu.memory_space<vmem>>, vector<512x256xbf16>
    %cst_8 = arith.constant dense<0.000000e+00> : vector<16x256xf32>
    %11 = tpu.matmul %9, %10, %cst_8 {dimension_numbers = #tpu.dot_dimension_numbers<[1], [0], [0], [1], [0, 0, 1, 1], [], []>} : vector<16x512xbf16>, vector<512x256xbf16>, vector<16x256xf32> -> vector<16x256xf32>
    %c0_9 = arith.constant 0 : index
    %c0_10 = arith.constant 0 : index
    %12 = vector.load %arg5[%c0_9, %c0_10] : memref<1x256xf32, #tpu.memory_space<vmem>>, vector<1x256xf32>
    %13 = vector.broadcast %12 : vector<1x256xf32> to vector<16x256xf32>
    %14 = arith.addf %11, %13 : vector<16x256xf32>
    %cst_11 = arith.constant 0.000000e+00 : f32
    %15 = vector.broadcast %cst_11 : f32 to vector<16x256xf32>
    %16 = arith.maximumf %14, %15 : vector<16x256xf32>
    %17 = arith.truncf %16 : vector<16x256xf32> to vector<16x256xbf16>
    %c0_12 = arith.constant 0 : index
    %c0_13 = arith.constant 0 : index
    %18 = vector.load %arg6[%c0_12, %c0_13] : memref<256x128xbf16, #tpu.memory_space<vmem>>, vector<256x128xbf16>
    %cst_14 = arith.constant dense<0.000000e+00> : vector<16x128xf32>
    %19 = tpu.matmul %17, %18, %cst_14 {dimension_numbers = #tpu.dot_dimension_numbers<[1], [0], [0], [1], [0, 0, 1, 1], [], []>} : vector<16x256xbf16>, vector<256x128xbf16>, vector<16x128xf32> -> vector<16x128xf32>
    %c0_15 = arith.constant 0 : index
    %c0_16 = arith.constant 0 : index
    %20 = vector.load %arg7[%c0_15, %c0_16] : memref<1x128xf32, #tpu.memory_space<vmem>>, vector<1x128xf32>
    %21 = vector.broadcast %20 : vector<1x128xf32> to vector<16x128xf32>
    %22 = arith.addf %19, %21 : vector<16x128xf32>
    %cst_17 = arith.constant 0.000000e+00 : f32
    %23 = vector.broadcast %cst_17 : f32 to vector<16x128xf32>
    %24 = arith.maximumf %22, %23 : vector<16x128xf32>
    %25 = arith.truncf %24 : vector<16x128xf32> to vector<16x128xbf16>
    %c0_18 = arith.constant 0 : index
    %c0_19 = arith.constant 0 : index
    %26 = vector.load %arg8[%c0_18, %c0_19] : memref<128x64xbf16, #tpu.memory_space<vmem>>, vector<128x64xbf16>
    %cst_20 = arith.constant dense<0.000000e+00> : vector<16x64xf32>
    %27 = tpu.matmul %25, %26, %cst_20 {dimension_numbers = #tpu.dot_dimension_numbers<[1], [0], [0], [1], [0, 0, 1, 1], [], []>} : vector<16x128xbf16>, vector<128x64xbf16>, vector<16x64xf32> -> vector<16x64xf32>
    %c0_21 = arith.constant 0 : index
    %c0_22 = arith.constant 0 : index
    %28 = vector.load %arg9[%c0_21, %c0_22] : memref<1x64xf32, #tpu.memory_space<vmem>>, vector<1x64xf32>
    %29 = vector.broadcast %28 : vector<1x64xf32> to vector<16x64xf32>
    %30 = arith.addf %27, %29 : vector<16x64xf32>
    %cst_23 = arith.constant 0.000000e+00 : f32
    %31 = vector.broadcast %cst_23 : f32 to vector<16x64xf32>
    %32 = arith.maximumf %30, %31 : vector<16x64xf32>
    %c0_24 = arith.constant 0 : index
    %c0_25 = arith.constant 0 : index
    %33 = vector.load %arg10[%c0_24, %c0_25] : memref<1x64xf32, #tpu.memory_space<vmem>>, vector<1x64xf32>
    %34 = vector.broadcast %33 : vector<1x64xf32> to vector<16x64xf32>
    %35 = arith.mulf %32, %34 : vector<16x64xf32>
    %cst_26 = arith.constant dense<0.000000e+00> : vector<16xf32>
    %36 = vector.multi_reduction <add>, %35, %cst_26 [1] : vector<16x64xf32> to vector<16xf32>
    %37 = vector.shape_cast %36 : vector<16xf32> to vector<1x16xf32>
    %c0_27 = arith.constant 0 : index
    %c0_28 = arith.constant 0 : index
    %38 = vector.load %arg11[%c0_27, %c0_28] : memref<1x1xf32, #tpu.memory_space<vmem>>, vector<1x1xf32>
    %39 = vector.broadcast %38 : vector<1x1xf32> to vector<1x16xf32>
    %40 = arith.addf %37, %39 : vector<1x16xf32>
    %c0_29 = arith.constant 0 : index
    %c0_30 = arith.constant 0 : index
    %41 = vector.load %arg12[%c0_29, %c0_30] : memref<1x16xf32, #tpu.memory_space<vmem>>, vector<1x16xf32>
    tpu.vector_store %arg12[%c0_29, %c0_30], %40 {strides = array<i32>} : memref<1x16xf32, #tpu.memory_space<vmem>>, vector<1x16xf32>,
    return
  }
  func.func @transform_0(%arg0: i32) -> (i32, i32) {
    %c0_i32 = arith.constant 0 : i32
    %c0_i32_0 = arith.constant 0 : i32
    return %arg0, %c0_i32 : i32, i32
  }
  func.func @transform_1(%arg0: i32) -> (i32, i32) {
    %c0_i32 = arith.constant 0 : i32
    %c0_i32_0 = arith.constant 0 : i32
    %c0_i32_1 = arith.constant 0 : i32
    return %c0_i32, %c0_i32_0 : i32, i32
  }
  func.func @transform_2(%arg0: i32) -> (i32, i32) {
    %c0_i32 = arith.constant 0 : i32
    %c0_i32_0 = arith.constant 0 : i32
    %c0_i32_1 = arith.constant 0 : i32
    return %c0_i32, %c0_i32_0 : i32, i32
  }
  func.func @transform_3(%arg0: i32) -> (i32, i32) {
    %c0_i32 = arith.constant 0 : i32
    %c0_i32_0 = arith.constant 0 : i32
    %c0_i32_1 = arith.constant 0 : i32
    return %c0_i32, %c0_i32_0 : i32, i32
  }
  func.func @transform_4(%arg0: i32) -> (i32, i32) {
    %c0_i32 = arith.constant 0 : i32
    %c0_i32_0 = arith.constant 0 : i32
    %c0_i32_1 = arith.constant 0 : i32
    return %c0_i32, %c0_i32_0 : i32, i32
  }
  func.func @transform_5(%arg0: i32) -> (i32, i32) {
    %c0_i32 = arith.constant 0 : i32
    %c0_i32_0 = arith.constant 0 : i32
    %c0_i32_1 = arith.constant 0 : i32
    return %c0_i32, %c0_i32_0 : i32, i32
  }
  func.func @transform_6(%arg0: i32) -> (i32, i32) {
    %c0_i32 = arith.constant 0 : i32
    %c0_i32_0 = arith.constant 0 : i32
    %c0_i32_1 = arith.constant 0 : i32
    return %c0_i32, %c0_i32_0 : i32, i32
  }
  func.func @transform_7(%arg0: i32) -> (i32, i32) {
    %c0_i32 = arith.constant 0 : i32
    %c0_i32_0 = arith.constant 0 : i32
    %c0_i32_1 = arith.constant 0 : i32
    return %c0_i32, %c0_i32_0 : i32, i32
  }
  func.func @transform_8(%arg0: i32) -> (i32, i32) {
    %c0_i32 = arith.constant 0 : i32
    %c0_i32_0 = arith.constant 0 : i32
    %c0_i32_1 = arith.constant 0 : i32
    return %c0_i32, %c0_i32_0 : i32, i32
  }
  func.func @transform_9(%arg0: i32) -> (i32, i32) {
    %c0_i32 = arith.constant 0 : i32
    %c0_i32_0 = arith.constant 0 : i32
    %c0_i32_1 = arith.constant 0 : i32
    return %c0_i32, %c0_i32_0 : i32, i32
  }
  func.func @transform_10(%arg0: i32) -> (i32, i32) {
    %c0_i32 = arith.constant 0 : i32
    %c0_i32_0 = arith.constant 0 : i32
    %c0_i32_1 = arith.constant 0 : i32
    return %c0_i32, %c0_i32_0 : i32, i32
  }
  func.func @transform_11(%arg0: i32) -> (i32, i32) {
    %c0_i32 = arith.constant 0 : i32
    %c0_i32_0 = arith.constant 0 : i32
    return %c0_i32, %arg0 : i32, i32
  }
}

</mosaic_0001>

<bundles_post_ra>
// kernel: tpu_custom_call.1
= control target key start
LH: loop header
LB: loop body
LE: loop exit
PB: predicated region body
PF: predicated region fallthrough
CT: control target
= control target key end

     0   :  { %s1620_s0 = inlined_call_operand.vmem [shape: f32[16,32], index: 0, kind: input, shape index: {}]   ;;  %s1621_s1 = inlined_call_operand.vmem [shape: bf16[32,512], index: 1, kind: input, shape index: {}]   ;;  %s1622_s2 = inlined_call_operand.vmem [shape: f32[1,512], index: 2, kind: input, shape index: {}]   ;;  %s1623_s3 = inlined_call_operand.hbm [shape: bf16[512,256], index: 3, kind: input, shape index: {}]   ;;  %s1624_s4 = inlined_call_operand.vmem [shape: f32[1,256], index: 4, kind: input, shape index: {}]   ;;  %s1625_s5 = inlined_call_operand.hbm [shape: bf16[256,128], index: 5, kind: input, shape index: {}]   ;;  %s1626_s6 = inlined_call_operand.vmem [shape: f32[1,128], index: 6, kind: input, shape index: {}]   ;;  %s1627_s7 = inlined_call_operand.vmem [shape: bf16[128,64], index: 7, kind: input, shape index: {}]   ;;  %s1628_s8 = inlined_call_operand.vmem [shape: f32[1,64], index: 8, kind: input, shape index: {}]   ;;  %s1629_s9 = inlined_call_operand.vmem [shape: f32[1,64], index: 9, kind: input, shape index: {}]   ;;  %s1630_s10 = inlined_call_operand.<no memory space> [shape: f32[1,1], index: 10, kind: input, shape index: {}]   ;;  %s1631_s11 = inlined_call_operand.hbm [shape: f32[1,16], index: 11, kind: output, shape index: {}]  }
   0x1   :  { %v16_v0 = vstv %s1630_s10 }
   0x2   :  { %17 = vst [vmem:[#allocation2] sm:$0x1] %v16_v0 }
   0x3   :  { %18 = vsyncpa [#allocation4], 0 }
   0x4   :  { %19 = vsyncpa [#allocation7], 0 }
   0x5   :  { %20 = vsyncpa [#allocation5], 0  ;;  %s1450_s19 = smov [#allocation3]  }
   0x6   :  { %s32_s20 = sshll.u32 %s1450_s19, 4  ;;  %s33_s20 = int_to_ptr.vmem [resolvable:$true] %s32_s20 }
   0x7   :  { %s1392_s21 = scalar_lea.vmem %s33_s20, 8192  ;;  %p1397_p1 = scmp.lt.s32.totalorder %s33_s20, %s33_s20 }
   0x8   :  { %p1393_p0 = scmp.ne.s32.totalorder %s33_s20, %s1392_s21  ;;  %p1398_p2 = scmp.lt.s32.totalorder %s1392_s21, %s1392_s21 }
   0xa   :  { %p1399_p3 = por %p1398_p2, %p1397_p1 }
   0xc   :  { %p1400_p4 = pnand %p1399_p3, %p1393_p0 }
   0xe   :  { %1403 = shalt.err (!%p1400_p4)
}
   0xf   :  { %s1451_s22 = smov 128   ;;  %s1452_s23 = smov 8  }
  0x10   :  { %38 = dma.hbm_to_vmem [thread:$0]  %s1623_s3, 8192, %s33_s20, [#allocation4], %s1451_s22, %s1451_s22, %s1452_s23  }
  0x11   :  { %s1453_s10 = smov [#allocation6]  }
  0x12   :  { %s46_s26 = sshll.u32 %s1453_s10, 4  ;;  %s47_s26 = int_to_ptr.vmem [resolvable:$true] %s46_s26 }
  0x13   :  { %s1412_s27 = scalar_lea.vmem %s47_s26, 2048  ;;  %p1417_p6 = scmp.lt.s32.totalorder %s47_s26, %s47_s26 }
  0x14   :  { %p1413_p5 = scmp.ne.s32.totalorder %s47_s26, %s1412_s27  ;;  %p1418_p7 = scmp.lt.s32.totalorder %s1412_s27, %s1412_s27 }
  0x16   :  { %p1419_p8 = por %p1418_p7, %p1417_p6 }
  0x18   :  { %p1420_p9 = pnand %p1419_p8, %p1413_p5 }
  0x1a   :  { %1423 = shalt.err (!%p1420_p9)
}
  0x1b   :  { %s1454_s28 = smov 64   ;;  %s1455_s29 = smov 4  }
  0x1c   :  { %52 = dma.hbm_to_vmem [thread:$0]  %s1625_s5, 2048, %s47_s26, [#allocation7], %s1454_s28, %s1454_s28, %s1455_s29  }
  0x1d   :  { %1444 = dma.done.wait [#allocation4], 8192  }
  0x1e   :  { %1445 = vsyncadd [#allocation4], 4294959104 }
  0x1f   :  { %1446 = dma.done.wait [#allocation7], 2048  }
  0x20   :  { %1447 = vsyncadd [#allocation7], 4294965248  ;;  %v1456_v1 = vmov 0   ;;  %v1252_v2 = vld [vmem:[%s1621_s1 + $0x24] ss:$16 sps:$4 sm:$0xff]   ;;  %v71_v11 = vld [vmem:[%s1620_s0 + $0x8] sm:$0xff] }
  0x21   :  { %179 = vmatprep.mubr.bf16.mxu0 %v1456_v1  ;;  %222 = vmatprep.mubr.bf16.mxu1 %v1456_v1  ;;  %v1254_v3 = vld [vmem:[%s1621_s1 + $0x2c] ss:$16 sps:$4 sm:$0xff]   ;;  %v1256_v4 = vld [vmem:[%s1621_s1 + $0x20] ss:$16 sps:$4 sm:$0xff]   ;;  %v1257_v5 = vld [vmem:[%s1621_s1 + $0x28] ss:$16 sps:$4 sm:$0xff]  }
  0x22   :  { %1250 = vset.pattern.permute.xlu1 %v1456_v1  ;;  %1251 = vset.pattern.permute.xlu0 %v1456_v1  ;;  %v1258_v6 = vld [vmem:[%s1621_s1 + $0x4] ss:$16 sps:$4 sm:$0xff]   ;;  %v1260_v7 = vld [vmem:[%s1621_s1 + $0xc] ss:$16 sps:$4 sm:$0xff]   ;;  %v1262_v8 = vld [vmem:[%s1621_s1] ss:$16 sps:$4 sm:$0xff]  }
  0x23   :  { %159 = vmatprep.subr.bf16.mxu0 %v1252_v2  ;;  %202 = vmatprep.subr.bf16.mxu1 %v1254_v3  ;;  %v1263_v9 = vld [vmem:[%s1621_s1 + $0x8] ss:$16 sps:$4 sm:$0xff]   ;;  %v70_v10 = vld [vmem:[%s1620_s0] sm:$0xff]  ;;  %vm143_vm0 = vcmask 261120   ;;  %vm1458_vm1 = vmmov 0   ;;  %vm1035_vm2 = vcmask 523264  }
  0x24   :  { %160 = vmatpush1.bf16.msra.mxu0 %v1256_v4  ;;  %203 = vmatpush1.bf16.msra.mxu1 %v1257_v5  ;;  %v1264_v12 = vld [vmem:[#allocation3 + $0x70] ss:$8 sps:$4 sm:$0xff]   ;;  %v72_v13 = vpack.c.bf16 %v71_v11, %v70_v10  ;;  %v1266_v14 = vld [vmem:[#allocation3 + $0x74] ss:$8 sps:$4 sm:$0xff]   ;;  %v1272_v17 = vld [vmem:[#allocation3 + $0x64] ss:$8 sps:$4 sm:$0xff]  }
  0x25   :  { %161 = vmatprep.subr.bf16.mxu0 %v1258_v6  ;;  %204 = vmatprep.subr.bf16.mxu1 %v1260_v7  ;;  %v1267_v15 = vld [vmem:[#allocation3 + $0x170] ss:$8 sps:$4 sm:$0xff]   ;;  %v1269_v16 = vld [vmem:[#allocation3 + $0x174] ss:$8 sps:$4 sm:$0xff]   ;;  %v1275_v18 = vld [vmem:[#allocation3 + $0x164] ss:$8 sps:$4 sm:$0xff]  }
  0x26   :  { %v1270_v19 = vld [vmem:[#allocation3 + $0x60] ss:$8 sps:$4 sm:$0xff]   ;;  %v1278_v21 = vld [vmem:[#allocation3 + $0x54] ss:$8 sps:$4 sm:$0xff]   ;;  %v1276_v23 = vld [vmem:[#allocation3 + $0x50] ss:$8 sps:$4 sm:$0xff]  }
  0x27   :  { %v1273_v20 = vld [vmem:[#allocation3 + $0x160] ss:$8 sps:$4 sm:$0xff]   ;;  %v1281_v22 = vld [vmem:[#allocation3 + $0x154] ss:$8 sps:$4 sm:$0xff]   ;;  %v1279_v24 = vld [vmem:[#allocation3 + $0x150] ss:$8 sps:$4 sm:$0xff]  }
  0x28   :  { %162 = vmatpush1.bf16.msra.mxu0 %v1262_v8  ;;  %205 = vmatpush1.bf16.msra.mxu1 %v1263_v9  ;;  %v1284_v25 = vld [vmem:[#allocation3 + $0x44] ss:$8 sps:$4 sm:$0xff]   ;;  %v1282_v27 = vld [vmem:[#allocation3 + $0x40] ss:$8 sps:$4 sm:$0xff]   ;;  %v1290_v29 = vld [vmem:[#allocation3 + $0x34] ss:$8 sps:$4 sm:$0xff]  }
  0x29   :  { %641 = vmatprep.subr.bf16.mxu0 %v1266_v14  ;;  %684 = vmatprep.subr.bf16.mxu1 %v1269_v16  ;;  %v1287_v26 = vld [vmem:[#allocation3 + $0x144] ss:$8 sps:$4 sm:$0xff]   ;;  %v1285_v28 = vld [vmem:[#allocation3 + $0x140] ss:$8 sps:$4 sm:$0xff]   ;;  %v1293_v30 = vld [vmem:[#allocation3 + $0x134] ss:$8 sps:$4 sm:$0xff]   ;;  %v83_v14 = vlaneseq }
  0x2a   :  { %v1288_v31 = vld [vmem:[#allocation3 + $0x30] ss:$8 sps:$4 sm:$0xff]   ;;  %v1296_v33 = vld [vmem:[#allocation3 + $0x24] ss:$8 sps:$4 sm:$0xff]   ;;  %v1294_v35 = vld [vmem:[#allocation3 + $0x20] ss:$8 sps:$4 sm:$0xff]  }
  0x2b   :  { %1096 = vmatmul.mubr.msk.bf16.vlgmr.msra.gmra.mxu0 %vm143_vm0, %v72_v13  ;;  %1097 = vmatmul.mubr.msk.bf16.vlgmr.msra.gmra.mxu1 %vm143_vm0, %v72_v13  ;;  %v1291_v32 = vld [vmem:[#allocation3 + $0x130] ss:$8 sps:$4 sm:$0xff]   ;;  %v1299_v34 = vld [vmem:[#allocation3 + $0x124] ss:$8 sps:$4 sm:$0xff]   ;;  %v1297_v36 = vld [vmem:[#allocation3 + $0x120] ss:$8 sps:$4 sm:$0xff]  }
  0x2c   :  { %642 = vmatpush1.bf16.msra.mxu0 %v1264_v12  ;;  %685 = vmatpush1.bf16.msra.mxu1 %v1267_v15  ;;  %v1302_v37 = vld [vmem:[#allocation3 + $0x14] ss:$8 sps:$4 sm:$0xff]   ;;  %v1300_v39 = vld [vmem:[#allocation3 + $0x10] ss:$8 sps:$4 sm:$0xff]   ;;  %v1308_v41 = vld [vmem:[#allocation3 + $0x4] ss:$8 sps:$4 sm:$0xff]  }
  0x2d   :  { %643 = vmatprep.subr.bf16.mxu0 %v1272_v17  ;;  %686 = vmatprep.subr.bf16.mxu1 %v1275_v18  ;;  %v1305_v38 = vld [vmem:[#allocation3 + $0x114] ss:$8 sps:$4 sm:$0xff]   ;;  %v1303_v40 = vld [vmem:[#allocation3 + $0x110] ss:$8 sps:$4 sm:$0xff]   ;;  %v1311_v42 = vld [vmem:[#allocation3 + $0x104] ss:$8 sps:$4 sm:$0xff]  }
  0x2e   :  { %v1306_v43 = vld [vmem:[#allocation3] ss:$8 sps:$4 sm:$0xff]   ;;  %v1314_v45 = vld [vmem:[#allocation3 + $0xf4] ss:$8 sps:$4 sm:$0xff]   ;;  %v1312_v47 = vld [vmem:[#allocation3 + $0xf0] ss:$8 sps:$4 sm:$0xff]  }
  0x2f   :  { %v1309_v44 = vld [vmem:[#allocation3 + $0x100] ss:$8 sps:$4 sm:$0xff]   ;;  %v1317_v46 = vld [vmem:[#allocation3 + $0x1f4] ss:$8 sps:$4 sm:$0xff]   ;;  %v1315_v48 = vld [vmem:[#allocation3 + $0x1f0] ss:$8 sps:$4 sm:$0xff]  }
  0x30   :  { %644 = vmatpush1.bf16.msra.mxu0 %v1270_v19  ;;  %687 = vmatpush1.bf16.msra.mxu1 %v1273_v20  ;;  %v1320_v49 = vld [vmem:[#allocation3 + $0xe4] ss:$8 sps:$4 sm:$0xff]   ;;  %v1318_v51 = vld [vmem:[#allocation3 + $0xe0] ss:$8 sps:$4 sm:$0xff]   ;;  %v1326_v53 = vld [vmem:[#allocation3 + $0xd4] ss:$8 sps:$4 sm:$0xff]  }
  0x31   :  { %645 = vmatprep.subr.bf16.mxu0 %v1278_v21  ;;  %688 = vmatprep.subr.bf16.mxu1 %v1281_v22  ;;  %v1323_v50 = vld [vmem:[#allocation3 + $0x1e4] ss:$8 sps:$4 sm:$0xff]   ;;  %v1321_v52 = vld [vmem:[#allocation3 + $0x1e0] ss:$8 sps:$4 sm:$0xff]   ;;  %v1329_v54 = vld [vmem:[#allocation3 + $0x1d4] ss:$8 sps:$4 sm:$0xff]  }
  0x32   :  { %v1324_v55 = vld [vmem:[#allocation3 + $0xd0] ss:$8 sps:$4 sm:$0xff]   ;;  %v1332_v57 = vld [vmem:[#allocation3 + $0xc4] ss:$8 sps:$4 sm:$0xff]   ;;  %v1330_v59 = vld [vmem:[#allocation3 + $0xc0] ss:$8 sps:$4 sm:$0xff]  }
  0x33   :  { %v1327_v56 = vld [vmem:[#allocation3 + $0x1d0] ss:$8 sps:$4 sm:$0xff]   ;;  %v1335_v58 = vld [vmem:[#allocation3 + $0x1c4] ss:$8 sps:$4 sm:$0xff]   ;;  %v1333_v60 = vld [vmem:[#allocation3 + $0x1c0] ss:$8 sps:$4 sm:$0xff]  }
  0x34   :  { %646 = vmatpush1.bf16.msra.mxu0 %v1276_v23  ;;  %689 = vmatpush1.bf16.msra.mxu1 %v1279_v24  ;;  %v1338_v61 = vld [vmem:[#allocation3 + $0xb4] ss:$8 sps:$4 sm:$0xff]   ;;  %v1336_v63 = vld [vmem:[#allocation3 + $0xb0] ss:$8 sps:$4 sm:$0xff]   ;;  %v1344_v1 = vld [vmem:[#allocation3 + $0xa4] ss:$8 sps:$4 sm:$0xff]  }
  0x35   :  { %647 = vmatprep.subr.bf16.mxu0 %v1284_v25  ;;  %690 = vmatprep.subr.bf16.mxu1 %v1287_v26  ;;  %v1341_v62 = vld [vmem:[#allocation3 + $0x1b4] ss:$8 sps:$4 sm:$0xff]   ;;  %v1339_v0 = vld [vmem:[#allocation3 + $0x1b0] ss:$8 sps:$4 sm:$0xff]   ;;  %v1347_v2 = vld [vmem:[#allocation3 + $0x1a4] ss:$8 sps:$4 sm:$0xff]  }
  0x36   :  { %v1342_v3 = vld [vmem:[#allocation3 + $0xa0] ss:$8 sps:$4 sm:$0xff]   ;;  %v1350_v5 = vld [vmem:[#allocation3 + $0x94] ss:$8 sps:$4 sm:$0xff]   ;;  %v1348_v7 = vld [vmem:[#allocation3 + $0x90] ss:$8 sps:$4 sm:$0xff]  }
  0x37   :  { %v1345_v4 = vld [vmem:[#allocation3 + $0x1a0] ss:$8 sps:$4 sm:$0xff]   ;;  %v1353_v6 = vld [vmem:[#allocation3 + $0x194] ss:$8 sps:$4 sm:$0xff]   ;;  %v1351_v8 = vld [vmem:[#allocation3 + $0x190] ss:$8 sps:$4 sm:$0xff]  }
  0x38   :  { %648 = vmatpush1.bf16.msra.mxu0 %v1282_v27  ;;  %691 = vmatpush1.bf16.msra.mxu1 %v1285_v28  ;;  %v1356_v9 = vld [vmem:[#allocation3 + $0x84] ss:$8 sps:$4 sm:$0xff]   ;;  %v1354_v11 = vld [vmem:[#allocation3 + $0x80] ss:$8 sps:$4 sm:$0xff]   ;;  %v1360_v13 = vld [vmem:[#allocation6 + $0x78] sm:$0xff]   ;;  %v1560_v15 = vshrl.u32 %v83_v14, 7 }
  0x39   :  { %649 = vmatprep.subr.bf16.mxu0 %v1290_v29  ;;  %692 = vmatprep.subr.bf16.mxu1 %v1293_v30  ;;  %v1359_v10 = vld [vmem:[#allocation3 + $0x184] ss:$8 sps:$4 sm:$0xff]   ;;  %v1357_v12 = vld [vmem:[#allocation3 + $0x180] ss:$8 sps:$4 sm:$0xff]   ;;  %vm1067_vm3 = vcmask 130112   ;;  %vm1070_vm4 = vcmask 122880  }
  0x3a   :  { %v89_v16 = vsub.s32 1, %v1560_v15  ;;  %v97_v17 = vsub.s32 3, %v1560_v15  ;;  %v1565_v18 = vsub.s32 0, %v1560_v15  ;;  %v93_v19 = vsub.s32 2, %v1560_v15  ;;  %v81_v20 = vld [vmem:[%s1622_s2] sm:$0xf] }
  0x3c   :  { %650 = vmatpush1.bf16.msra.mxu0 %v1288_v31  ;;  %693 = vmatpush1.bf16.msra.mxu1 %v1291_v32  ;;  %v90_v23 = vrot.slane %v81_v20, %v89_v16  ;;  %v98_v24 = vrot.slane %v81_v20, %v97_v17  ;;  %v86_v25 = vrot.slane %v81_v20, %v1565_v18 }
  0x3d   :  { %651 = vmatprep.subr.bf16.mxu0 %v1296_v33  ;;  %694 = vmatprep.subr.bf16.mxu1 %v1299_v34  ;;  %v94_v26 = vrot.slane %v81_v20, %v93_v19 }
  0x40   :  { %652 = vmatpush1.bf16.msra.mxu0 %v1294_v35  ;;  %695 = vmatpush1.bf16.msra.mxu1 %v1297_v36 }
  0x41   :  { %653 = vmatprep.subr.bf16.mxu0 %v1302_v37  ;;  %696 = vmatprep.subr.bf16.mxu1 %v1305_v38 }
  0x44   :  { %654 = vmatpush1.bf16.msra.mxu0 %v1300_v39  ;;  %697 = vmatpush1.bf16.msra.mxu1 %v1303_v40 }
  0x45   :  { %655 = vmatprep.subr.bf16.mxu0 %v1308_v41  ;;  %698 = vmatprep.subr.bf16.mxu1 %v1311_v42 }
  0x48   :  { %656 = vmatpush1.bf16.msra.mxu0 %v1306_v43  ;;  %699 = vmatpush1.bf16.msra.mxu1 %v1309_v44 }
  0x49   :  { %657 = vmatprep.subr.bf16.mxu0 %v1314_v45  ;;  %700 = vmatprep.subr.bf16.mxu1 %v1317_v46 }
  0x4c   :  { %658 = vmatpush2.bf16.msra.mxu0 %v1312_v47  ;;  %701 = vmatpush2.bf16.msra.mxu1 %v1315_v48 }
  0x4d   :  { %659 = vmatprep.subr.bf16.mxu0 %v1320_v49  ;;  %702 = vmatprep.subr.bf16.mxu1 %v1323_v50 }
  0x50   :  { %660 = vmatpush2.bf16.msra.mxu0 %v1318_v51  ;;  %703 = vmatpush2.bf16.msra.mxu1 %v1321_v52  ;;  %v1361_v51 = vld [vmem:[#allocation6 + $0x38] sm:$0xff]  }
  0x51   :  { %661 = vmatprep.subr.bf16.mxu0 %v1326_v53  ;;  %704 = vmatprep.subr.bf16.mxu1 %v1329_v54  ;;  %v1362_v54 = vld [vmem:[#allocation6 + $0x70] sm:$0xff]  }
  0x54   :  { %662 = vmatpush2.bf16.msra.mxu0 %v1324_v55  ;;  %705 = vmatpush2.bf16.msra.mxu1 %v1327_v56  ;;  %v1363_v55 = vld [vmem:[#allocation6 + $0x30] sm:$0xff]   ;;  %v1364_v56 = vld [vmem:[#allocation6 + $0x68] sm:$0xff]  }
  0x55   :  { %663 = vmatprep.subr.bf16.mxu0 %v1332_v57  ;;  %706 = vmatprep.subr.bf16.mxu1 %v1335_v58  ;;  %v1365_v57 = vld [vmem:[#allocation6 + $0x28] sm:$0xff]   ;;  %v1366_v58 = vld [vmem:[#allocation6 + $0x60] sm:$0xff]  }
  0x58   :  { %664 = vmatpush2.bf16.msra.mxu0 %v1330_v59  ;;  %707 = vmatpush2.bf16.msra.mxu1 %v1333_v60  ;;  %v1367_v59 = vld [vmem:[#allocation6 + $0x20] sm:$0xff]   ;;  %v1368_v60 = vld [vmem:[#allocation6 + $0x58] sm:$0xff]  }
  0x59   :  { %665 = vmatprep.subr.bf16.mxu0 %v1338_v61  ;;  %708 = vmatprep.subr.bf16.mxu1 %v1341_v62  ;;  %v1369_v61 = vld [vmem:[#allocation6 + $0x18] sm:$0xff]   ;;  %v1370_v62 = vld [vmem:[#allocation6 + $0x50] sm:$0xff]  }
  0x5c   :  { %666 = vmatpush2.bf16.msra.mxu0 %v1336_v63  ;;  %709 = vmatpush2.bf16.msra.mxu1 %v1339_v0  ;;  %v1371_v63 = vld [vmem:[#allocation6 + $0x10] sm:$0xff]   ;;  %v1372_v0 = vld [vmem:[#allocation6 + $0x48] sm:$0xff]  }
  0x5d   :  { %667 = vmatprep.subr.bf16.mxu0 %v1344_v1  ;;  %710 = vmatprep.subr.bf16.mxu1 %v1347_v2  ;;  %v1373_v1 = vld [vmem:[#allocation6 + $0x8] sm:$0xff]   ;;  %v1374_v2 = vld [vmem:[#allocation6 + $0x40] sm:$0xff]  }
  0x60   :  { %668 = vmatpush2.bf16.msra.mxu0 %v1342_v3  ;;  %711 = vmatpush2.bf16.msra.mxu1 %v1345_v4  ;;  %v1375_v3 = vld [vmem:[#allocation6] sm:$0xff]   ;;  %v1376_v4 = vld [vmem:[%s1627_s7 + $0x38] sm:$0xff]  }
  0x61   :  { %669 = vmatprep.subr.bf16.mxu0 %v1350_v5  ;;  %712 = vmatprep.subr.bf16.mxu1 %v1353_v6  ;;  %v1457_v5 = vmov 0.0   ;;  %v1377_v6 = vld [vmem:[%s1627_s7 + $0x30] sm:$0xff]  }
  0x64   :  { %670 = vmatpush2.bf16.msra.mxu0 %v1348_v7  ;;  %713 = vmatpush2.bf16.msra.mxu1 %v1351_v8  ;;  %v1378_v7 = vld [vmem:[%s1627_s7 + $0x28] sm:$0xff]   ;;  %v1379_v8 = vld [vmem:[%s1627_s7 + $0x20] sm:$0xff]  }
  0x65   :  { %671 = vmatprep.subr.bf16.mxu0 %v1356_v9  ;;  %714 = vmatprep.subr.bf16.mxu1 %v1359_v10  ;;  %v309_v9 = vld [vmem:[%s1624_s4] sm:$0x3] }
  0x66   :  { %v318_v10 = vrot.slane %v309_v9, %v89_v16 }
  0x68   :  { %672 = vmatpush2.bf16.msra.mxu0 %v1354_v11  ;;  %715 = vmatpush2.bf16.msra.mxu1 %v1357_v12  ;;  %v314_v11 = vrot.slane %v309_v9, %v1565_v18 }
  0x69   :  { %1189 = vmatprep.subr.bf16.mxu0 %v1360_v13  ;;  %1220 = vmatprep.subr.bf16.mxu1 %v1457_v5 }
  0xeb   :  { %v181_v21 = vpop.f32.mrf.mxu0  ;;  %v224_v22 = vpop.f32.mrf.mxu1 }
  0xec   :  { %v182_v35 = vadd.f32 %v181_v21, %v86_v25  ;;  %v225_v36 = vadd.f32 %v224_v22, %v94_v26 }
  0xed   :  { %v183_v27 = vpop.f32.mrf.mxu0  ;;  %v226_v28 = vpop.f32.mrf.mxu1 }
  0xee   :  { %v184_v31 = vadd.f32 %v183_v27, %v90_v23  ;;  %v227_v32 = vadd.f32 %v226_v28, %v98_v24  ;;  %v233_v47 = vmax.f32 %v182_v35, 0.0  ;;  %v235_v48 = vmax.f32 %v225_v36, 0.0 }
  0xef   :  { %v185_v29 = vpop.f32.mrf.mxu0  ;;  %v228_v30 = vpop.f32.mrf.mxu1 }
  0xf0   :  { %v186_v33 = vadd.f32 %v185_v29, %v86_v25  ;;  %v229_v34 = vadd.f32 %v228_v30, %v94_v26  ;;  %v234_v43 = vmax.f32 %v184_v31, 0.0  ;;  %v236_v44 = vmax.f32 %v227_v32, 0.0 }
  0xf1   :  { %v187_v37 = vpop.f32.mrf.mxu0  ;;  %v230_v38 = vpop.f32.mrf.mxu1 }
  0xf2   :  { %v188_v39 = vadd.f32 %v187_v37, %v90_v23  ;;  %v231_v40 = vadd.f32 %v230_v38, %v98_v24  ;;  %v237_v41 = vmax.f32 %v186_v33, 0.0  ;;  %v239_v42 = vmax.f32 %v229_v34, 0.0  ;;  %v1380_v37 = vld [vmem:[%s1627_s7 + $0x18] sm:$0xff]   ;;  %v1381_v38 = vld [vmem:[%s1627_s7 + $0x10] sm:$0xff]  }
  0xf4   :  { %v238_v45 = vmax.f32 %v188_v39, 0.0  ;;  %v240_v46 = vmax.f32 %v231_v40, 0.0  ;;  %v241_v52 = vpack.c.bf16 %v237_v41, %v233_v47  ;;  %v243_v53 = vpack.c.bf16 %v239_v42, %v235_v48  ;;  %v1382_v39 = vld [vmem:[%s1627_s7 + $0x8] sm:$0xff]   ;;  %v1383_v40 = vld [vmem:[%s1627_s7] sm:$0xff]  }
  0xf6   :  { %v242_v49 = vpack.c.bf16 %v238_v45, %v234_v43  ;;  %v244_v50 = vpack.c.bf16 %v240_v46, %v236_v44  ;;  %v1162_v44 = vld [vmem:[%s1626_s6] ss:$0 sm:$0xff] }
  0xf8   :  { %673 = vmatprep.mubr.bf16.mxu0 %v242_v49  ;;  %716 = vmatprep.mubr.bf16.mxu1 %v244_v50 }
  0xf9   :  { %674 = vmatmul.mubr.bf16.vlgmr.msra.gmra.mxu0 %v241_v52  ;;  %717 = vmatmul.mubr.bf16.vlgmr.msra.gmra.mxu1 %v243_v53  ;;  %v1042_v53 = vld [vmem:[#allocation2] sm:$0x1] }
  0xfa   :  { %1190 = vmatpush3.bf16.msra.mxu0 %v1361_v51  ;;  %1221 = vmatpush3.bf16.msra.mxu1 %v1376_v4 }
  0xfb   :  { %1191 = vmatprep.subr.bf16.mxu0 %v1362_v54  ;;  %1222 = vmatprep.subr.bf16.mxu1 %v1457_v5  ;;  %v1179_v54 = vld [vmem:[%s1628_s8] ss:$0 sm:$0xff]  ;;  %s1459_s8 = smov [#allocation8]  }
  0xfc   :  { %1236 = vmatprep.mubr.msk.bf16.mxu1 %vm1458_vm1, %v1457_v5  ;;  %1045 = vperm.xlu1 %1250, %v1042_v53  }
  0xfe   :  { %1192 = vmatpush3.bf16.msra.mxu0 %v1363_v55  ;;  %1223 = vmatpush3.bf16.msra.mxu1 %v1377_v6 }
  0xff   :  { %1193 = vmatprep.subr.bf16.mxu0 %v1364_v56  ;;  %1224 = vmatprep.subr.bf16.mxu1 %v1457_v5 }
 0x102   :  { %1194 = vmatpush3.bf16.msra.mxu0 %v1365_v57  ;;  %1225 = vmatpush3.bf16.msra.mxu1 %v1378_v7 }
 0x103   :  { %1195 = vmatprep.subr.bf16.mxu0 %v1366_v58  ;;  %1226 = vmatprep.subr.bf16.mxu1 %v1457_v5  ;;  %v1188_v58 = vld [vmem:[%s1629_s9] ss:$0 sm:$0xff]  ;;  %s1078_s9 = sshll.u32 %s1459_s8, 4  ;;  %s1079_s9 = int_to_ptr.vmem [resolvable:$true] %s1078_s9 }
 0x104   :  { %s1424_s28 = scalar_lea.vmem %s1079_s9, 16  ;;  %s1428_s29 = scalar_lea.vmem %s1079_s9, 32 }
 0x105   :  { %p1425_p10 = scmp.ne.s32.totalorder %s1079_s9, %s1424_s28  ;;  %p1429_p11 = scmp.lt.s32.totalorder %s1079_s9, %s1079_s9 }
 0x106   :  { %1196 = vmatpush3.bf16.msra.mxu0 %v1367_v59  ;;  %1227 = vmatpush3.bf16.msra.mxu1 %v1379_v8  ;;  %p1430_p12 = scmp.lt.s32.totalorder %s1428_s29, %s1424_s28 }
 0x107   :  { %1197 = vmatprep.subr.bf16.mxu0 %v1368_v60  ;;  %1228 = vmatprep.subr.bf16.mxu1 %v1457_v5 }
 0x108   :  { %p1431_p13 = por %p1430_p12, %p1429_p11 }
 0x10a   :  { %1198 = vmatpush3.bf16.msra.mxu0 %v1369_v61  ;;  %1229 = vmatpush3.bf16.msra.mxu1 %v1380_v37  ;;  %p1432_p0 = pnand %p1431_p13, %p1425_p10 }
 0x10b   :  { %1199 = vmatprep.subr.bf16.mxu0 %v1370_v62  ;;  %1230 = vmatprep.subr.bf16.mxu1 %v1457_v5 }
 0x10e   :  { %1200 = vmatpush3.bf16.msra.mxu0 %v1371_v63  ;;  %1231 = vmatpush3.bf16.msra.mxu1 %v1381_v38 }
 0x10f   :  { %1201 = vmatprep.subr.bf16.mxu0 %v1372_v0  ;;  %1232 = vmatprep.subr.bf16.mxu1 %v1457_v5 }
 0x112   :  { %1202 = vmatpush3.bf16.msra.mxu0 %v1373_v1  ;;  %1233 = vmatpush3.bf16.msra.mxu1 %v1382_v39 }
 0x113   :  { %1203 = vmatprep.subr.bf16.mxu0 %v1374_v2  ;;  %1234 = vmatprep.subr.bf16.mxu1 %v1457_v5  ;;  %v1057_v5 = vand.u32 127, %v83_v14 }
 0x115   :  { %v1062_v7 = vadd.s32 4294967288, %v1057_v5  ;;  %v1060_v9 = vsub.s32 %v1057_v5, %v1560_v15 }
 0x116   :  { %1204 = vmatpush3.bf16.msra.mxu0 %v1375_v3  ;;  %1235 = vmatpush3.bf16.msra.mxu1 %v1383_v40 }
 0x177   :  { %v1046_v4 = vpop.permute.xlu1 %1045 }
 0x178   :  { %v1051_v6 = vrot.slane %v1046_v4, %v1565_v18 }
 0x1b9   :  { %v675_v12 = vpop.f32.mrf.mxu0  ;;  %v718_v13 = vpop.f32.mrf.mxu1 }
 0x1ba   :  { %v676_v21 = vadd.f32 %v675_v12, %v314_v11 }
 0x1bb   :  { %v677_v17 = vpop.f32.mrf.mxu0  ;;  %v720_v19 = vpop.f32.mrf.mxu1 }
 0x1bc   :  { %v678_v20 = vadd.f32 %v677_v17, %v318_v10  ;;  %v719_v29 = vadd.f32 %v718_v13, %v676_v21 }
 0x1bd   :  { %v679_v22 = vpop.f32.mrf.mxu0  ;;  %v722_v23 = vpop.f32.mrf.mxu1 }
 0x1be   :  { %v680_v24 = vadd.f32 %v679_v22, %v314_v11  ;;  %v721_v26 = vadd.f32 %v720_v19, %v678_v20  ;;  %v727_v34 = vmax.f32 %v719_v29, 0.0  ;;  %v1065_v11 = vsub.s32 %v1062_v7, %v1560_v15 }
 0x1bf   :  { %v681_v25 = vpop.f32.mrf.mxu0  ;;  %v724_v30 = vpop.f32.mrf.mxu1 }
 0x1c0   :  { %v723_v27 = vadd.f32 %v722_v23, %v680_v24  ;;  %v682_v28 = vadd.f32 %v681_v25, %v318_v10  ;;  %v728_v16 = vmax.f32 %v721_v26, 0.0 }
 0x1c2   :  { %v725_v31 = vadd.f32 %v724_v30, %v682_v28  ;;  %v729_v32 = vmax.f32 %v723_v27, 0.0 }
 0x1c4   :  { %v730_v33 = vmax.f32 %v725_v31, 0.0  ;;  %v731_v36 = vpack.c.bf16 %v729_v32, %v727_v34 }
 0x1c6   :  { %v732_v35 = vpack.c.bf16 %v730_v33, %v728_v16 }
 0x1c8   :  { %900 = vmatprep.mubr.bf16.mxu0 %v732_v35 }
 0x1c9   :  { %901 = vmatmul.mubr.bf16.vlgmr.msra.gmra.mxu0 %v731_v36 }
 0x289   :  { %v1205_v41 = vpop.f32.mrf.mxu0 }
 0x28b   :  { %v1206_v42 = vpop.f32.mrf.mxu0 }
 0x28c   :  { %v1207_v43 = vadd.f32 %v1206_v42, %v1205_v41 }
 0x28d   :  { %v1208_v45 = vpop.f32.mrf.mxu0 }
 0x28e   :  { %v903_v47 = vadd.f32 %v1207_v43, %v1162_v44 }
 0x28f   :  { %v1209_v46 = vpop.f32.mrf.mxu0 }
 0x290   :  { %v1210_v48 = vadd.f32 %v1209_v46, %v1208_v45  ;;  %v909_v50 = vmax.f32 %v903_v47, 0.0 }
 0x292   :  { %v906_v49 = vadd.f32 %v1210_v48, %v1162_v44 }
 0x294   :  { %v910_v51 = vmax.f32 %v906_v49, 0.0 }
 0x296   :  { %v911_v52 = vpack.c.bf16 %v910_v51, %v909_v50 }
 0x298   :  { %1237 = vmatmul.mubr.bf16.vlgmr.msra.gmra.mxu1 %v911_v52 }
 0x358   :  { %v1017_v55 = vpop.f32.mrf.mxu1 }
 0x359   :  { %v1018_v56 = vadd.f32 %v1179_v54, %v1017_v55 }
 0x35a   :  { %v1238_v57 = vpop.f32.mrf.mxu1 }
 0x35b   :  { %v1024_v59 = vmax.f32 %v1018_v56, 0.0 }
 0x35c   :  { %v1020_v60 = vpop.f32.mrf.mxu1 }
 0x35d   :  { %v1021_v61 = vadd.f32 %v1179_v54, %v1020_v60  ;;  %v1033_v62 = vmul.f32 %v1188_v58, %v1024_v59 }
 0x35e   :  { %v1239_v63 = vpop.f32.mrf.mxu1 }
 0x35f   :  { %v1025_v0 = vmax.f32 %v1021_v61, 0.0  ;;  %v1036_v1 = vsel %vm1035_vm2, %v1033_v62, 0.0 }
 0x360   :  { %1037 = vadd.xlane.f32.xlu0 %v1036_v1 }
 0x361   :  { %v1034_v2 = vmul.f32 %v1188_v58, %v1025_v0 }
 0x363   :  { %v1039_v3 = vsel %vm1035_vm2, %v1034_v2, 0.0 }
 0x364   :  { %1040 = vadd.xlane.f32.xlu0 %v1039_v3 }
 0x3e9   :  { %v1038_v8 = vpop.xlane.xlu0 %1037 }
 0x3ea   :  { %v1052_v10 = vadd.f32 %v1051_v6, %v1038_v8 }
 0x3ec   :  { %v1061_v17 = vrot.slane %v1052_v10, %v1060_v9 }
 0x3ed   :  { %v1041_v12 = vpop.xlane.xlu0 %1040 }
 0x3ee   :  { %v1053_v13 = vadd.f32 %v1051_v6, %v1041_v12 }
 0x3f0   :  { %v1066_v19 = vrot.slane %v1053_v13, %v1065_v11 }
 0x3f2   :  { %v1068_v20 = vsel %vm1067_vm3, %v1066_v19, %v1061_v17 }
 0x3f3   :  { %1071 = vst.msk [vmem:[#allocation8] sm:$0x1] %vm1070_vm4, %v1068_v20 }
 0x3f4   :  { %1435 = shalt.err (!%p1432_p0)
}
 0x3f5   :  { %1081 = dma.vmem_to_hbm [thread:$0]  %s1079_s9, 16, %s1631_s11, [#allocation5]  }
 0x3f6   :  { %1448 = dma.done.wait [#allocation5], 16  }
 0x3f7   :  { %1449 = vsyncadd [#allocation5], 4294967280 }
 0x3f8   :  { %1085 = vsyncpa [#allocation4], 1 }
 0x3f9   :  { %1086 = vsyncpa [#allocation7], 1 }
 0x3fa   :  { %1087 = vsyncpa [#allocation5], 1 }

</bundles_post_ra>
